<compile_context>
chip_gen: v7x
topology: tpu7x:2x2x1
jax: 0.10.0
libtpu: 0.0.40
codegen_flags: <defaults>
</compile_context>

<pallas_src>
import functools

import jax
import jax.numpy as jnp
import numpy as np
from jax import lax
from jax.experimental import pallas as pl
from jax.experimental.pallas import tpu as pltpu


def _round_up(x, m):
    return ((x + m - 1) // m) * m


def _cdiv(a, b):
    return -(-a // b)


def _device_tm_target():
    """Roofline-driven M-tile target: arithmetic intensity on the weight
    stream is exactly tm FLOPs/byte, so tm should exceed the HBM breakeven."""
    try:
        kind = jax.devices()[0].device_kind.lower()
    except Exception:
        return 512
    if "v6" in kind:
        return 640   # breakeven ~650 on v6e (918 TF/s vs ~1.4 TB/s)
    if "v7" in kind:
        return 512   # breakeven ~310; keep headroom for 64 MiB VMEM
    if "v5" in kind:
        return 384   # breakeven ~240
    return 512


def _vmem_budget_bytes():
    try:
        cap = int(pltpu.get_tpu_info().vmem_capacity_bytes)
    except Exception:
        cap = 64 << 20           # conservative fallback (v7x-sized)
    return (cap * 7) // 8        # headroom for compiler-internal scratch


def prepare_rtp_mlp_weights(gate_w, up_w, down_w, *, world_size, tn=None):
    """One-time weight relayout, OUTSIDE the per-call hot path.

    gate_w, up_w : (I, H)  torch nn.Linear layout
    down_w       : (H, I)
    Returns (gu_fused, down_t, tn):
      gu_fused : (world_size * n_per_shard * 2*tn, H) — per intermediate chunk
                 the gate rows then the up rows are stored back-to-back, zero
                 padded so every shard has n_per_shard full tn-sized chunks.
      down_t   : (world_size * n_per_shard * tn, H)  — down_proj.weight.T with
                 the same per-shard zero padding.
    """
    gate_w = jnp.asarray(gate_w)
    up_w = jnp.asarray(up_w)
    down_t = jnp.asarray(down_w).T                      # (I, H), done once
    I, H = gate_w.shape
    assert I % world_size == 0, "intermediate dim must divide by world_size"
    Ipw = I // world_size
    if tn is None:
        tn = 512 if Ipw >= 512 else _round_up(Ipw, 8)
    tn = int(tn)
    Ipw_pad = _round_up(Ipw, tn)
    n_per_shard = Ipw_pad // tn
    pad = Ipw_pad - Ipw

    def _shard_pad(w):                                  # (I, H) -> (ws, Ipw_pad, H)
        w = w.reshape(world_size, Ipw, H)
        if pad:
            w = jnp.pad(w, ((0, 0), (0, pad), (0, 0)))  # exact zeros -> contribute 0
        return w

    g = _shard_pad(gate_w).reshape(world_size, n_per_shard, 1, tn, H)
    u = _shard_pad(up_w).reshape(world_size, n_per_shard, 1, tn, H)
    gu = jnp.concatenate([g, u], axis=2).reshape(world_size * n_per_shard * 2 * tn, H)
    d = _shard_pad(down_t).reshape(world_size * n_per_shard * tn, H)
    return gu, d, tn


def _rtp_mlp_kernel(x_ref, gu_ref, down_ref, o_ref, acc_ref, *, tn):
    """One grid step: partial MLP for (shard w, intermediate chunk n).

    x_ref    : (tm, H)
    gu_ref   : (2*tn, H)  fused [gate chunk; up chunk] rows, torch (rows, H) layout
    down_ref : (tn, H)    rows of down_proj.weight.T (relayout done once offline)
    o_ref    : (tm, H)    block index invariant over (w, n) -> VMEM-resident
    acc_ref  : (tm, H)    f32 accumulator scratch
    """
    w = pl.program_id(1)
    n = pl.program_id(2)

    @pl.when((w == 0) & (n == 0))
    def _():
        acc_ref[...] = jnp.zeros_like(acc_ref)

    x = x_ref[...]                                            # (tm, H)
    # Single fused gate|up weight stream: one MXU pass, x read from VMEM once.
    # Contract the H axis of both operands directly (no HBM weight transpose).
    dims_nt = (((1,), (1,)), ((), ()))
    gu = lax.dot_general(x, gu_ref[...], dims_nt,
                         preferred_element_type=jnp.float32)  # (tm, 2*tn)
    g = gu[:, :tn]
    u = gu[:, tn:]
    h = (g * jax.nn.sigmoid(g)) * u                           # SiLU(g) * u, f32

    # (tm, tn) @ (tn, H) -> (tm, H), accumulated over (shard, chunk).
    dims_nn = (((1,), (0,)), ((), ()))
    acc_ref[...] += lax.dot_general(h.astype(x.dtype), down_ref[...], dims_nn,
                                    preferred_element_type=jnp.float32)

    @pl.when((w == pl.num_programs(1) - 1) & (n == pl.num_programs(2) - 1))
    def _():
        o_ref[...] = acc_ref[...].astype(o_ref.dtype)


def rtp_warpper_forward(x, gu_fused, down_t, *, world_size, tn, tm_target=None):
    """RtpWarpper(LlamaMLP).forward equivalent.

    x        : (B, S, H)
    gu_fused : fused gate/up weights from prepare_rtp_mlp_weights
    down_t   : transposed/padded down weights from prepare_rtp_mlp_weights
    """
    B, S, H = x.shape
    rows = down_t.shape[0]
    assert rows % (world_size * tn) == 0
    n_per_shard = rows // (world_size * tn)
    assert gu_fused.shape[0] == world_size * n_per_shard * 2 * tn
    I_pad = world_size * n_per_shard * tn

    M = B * S
    if tm_target is None:
        tm_target = _device_tm_target()
    sub = 16 if x.dtype == jnp.bfloat16 else 8
    num_m_tiles = max(1, _cdiv(M, tm_target))
    tm = _round_up(_cdiv(M, num_m_tiles), sub)       # balanced tiles, thin pad tail
    M_pad = tm * num_m_tiles

    xm = x.reshape(M, H)
    if M_pad != M:
        xm = jnp.pad(xm, ((0, M_pad - M), (0, 0)))

    out_dtype = x.dtype
    x_item = jnp.dtype(x.dtype).itemsize
    w_item = jnp.dtype(gu_fused.dtype).itemsize

    # --- VMEM working set: double-buffered inputs, resident out + acc, f32 temps.
    x_blk = tm * H * x_item
    gu_blk = 2 * tn * H * w_item
    dn_blk = tn * H * w_item
    o_blk = tm * H * jnp.dtype(out_dtype).itemsize
    acc_blk = tm * H * 4
    temps = 6 * tm * tn * 4                          # gu / g / u / h f32 temporaries
    fudge = 2 << 20

    budget = _vmem_budget_bytes()
    x_buffers = 2
    est = x_buffers * x_blk + 2 * (gu_blk + dn_blk) + 2 * o_blk + acc_blk + temps + fudge
    if est > budget:
        # x's block index is invariant over (w, n): single-buffering it costs one
        # un-hidden DMA per M-tile but reclaims tm*H bytes inside tight VMEM.
        x_buffers = 1
        est = x_buffers * x_blk + 2 * (gu_blk + dn_blk) + 2 * o_blk + acc_blk + temps + fudge
    vmem_limit = int(min(budget, max(32 << 20, est)))

    if x_buffers == 2:
        x_spec = pl.BlockSpec((tm, H), lambda i, w, n: (i, 0))
    else:
        x_spec = pl.BlockSpec((tm, H), lambda i, w, n: (i, 0),
                              pipeline_mode=pl.Buffered(1))

    wt_map = lambda i, w, n: (w * n_per_shard + n, 0)

    cost = pl.CostEstimate(
        flops=int(6 * M_pad * I_pad * H),
        transcendentals=int(M_pad * I_pad),
        bytes_accessed=int(3 * I_pad * H * w_item * num_m_tiles
                           + 2 * M_pad * H * x_item),
    )

    out = pl.pallas_call(
        functools.partial(_rtp_mlp_kernel, tn=tn),
        out_shape=jax.ShapeDtypeStruct((M_pad, H), out_dtype),
        grid_spec=pltpu.PrefetchScalarGridSpec(
            num_scalar_prefetch=0,
            grid=(num_m_tiles, world_size, n_per_shard),
            in_specs=[
                x_spec,                                       # activations
                pl.BlockSpec((2 * tn, H), wt_map),            # fused gate|up chunk
                pl.BlockSpec((tn, H), wt_map),                # down chunk (already (I, H))
            ],
            out_specs=pl.BlockSpec((tm, H), lambda i, w, n: (i, 0)),
            scratch_shapes=[pltpu.VMEM((tm, H), jnp.float32)],
        ),
        compiler_params=pltpu.CompilerParams(
            dimension_semantics=("parallel", "arbitrary", "arbitrary"),
            vmem_limit_bytes=vmem_limit),
        cost_estimate=cost,
    )(xm, gu_fused, down_t)

    if M_pad != M:
        out = out[:M]
    return out.reshape(B, S, H)


def reference_mlp(x, gate_w, up_w, down_w):
    B, S, H = x.shape
    xm = x.reshape(B * S, H)
    h = jax.nn.silu(xm @ gate_w.T) * (xm @ up_w.T)
    return (h @ down_w.T).reshape(B, S, H)


if __name__ == "__main__":
    key = jax.random.PRNGKey(0)

    # Small LlamaMLP-ish shapes: batch=2, seq=8, hidden=32, intermediate=64,
    # simulated rotation-parallel world_size=2.
    B, S, H, I, WS = 2, 8, 32, 64, 2
    kx, kg, ku, kd = jax.random.split(key, 4)
    x = jax.random.normal(kx, (B, S, H), dtype=jnp.float32)
    gate_w = jax.random.normal(kg, (I, H), dtype=jnp.float32) * 0.05
    up_w = jax.random.normal(ku, (I, H), dtype=jnp.float32) * 0.05
    down_w = jax.random.normal(kd, (H, I), dtype=jnp.float32) * 0.05

    gu, dn, tn = prepare_rtp_mlp_weights(gate_w, up_w, down_w, world_size=WS)
    fwd = jax.jit(functools.partial(rtp_warpper_forward, world_size=WS, tn=tn))
    out = jax.block_until_ready(fwd(x, gu, dn))
    ref = reference_mlp(x, gate_w, up_w, down_w)
    np.testing.assert_allclose(np.asarray(out), np.asarray(ref),
                               rtol=1e-4, atol=1e-4)

    # Second check: ragged per-shard intermediate (I=80, forced tn=32) so the
    # zero-padded-chunk path is exercised.
    I2 = 80
    kg2, ku2, kd2 = jax.random.split(kd, 3)
    gate2 = jax.random.normal(kg2, (I2, H), dtype=jnp.float32) * 0.05
    up2 = jax.random.normal(ku2, (I2, H), dtype=jnp.float32) * 0.05
    down2 = jax.random.normal(kd2, (H, I2), dtype=jnp.float32) * 0.05
    gu2, dn2, tn2 = prepare_rtp_mlp_weights(gate2, up2, down2, world_size=WS, tn=32)
    fwd2 = jax.jit(functools.partial(rtp_warpper_forward, world_size=WS, tn=tn2))
    out2 = jax.block_until_ready(fwd2(x, gu2, dn2))
    ref2 = reference_mlp(x, gate2, up2, down2)
    np.testing.assert_allclose(np.asarray(out2), np.asarray(ref2),
                               rtol=1e-4, atol=1e-4)

    print("KERNEL_OK")
</pallas_src>

<mosaic_0001>
module attributes {stable_mosaic.version = 11 : i64} {
  func.func @_rtp_mlp_kernel(%arg0: i32, %arg1: i32, %arg2: i32, %arg3: memref<16x32xf32, #tpu.memory_space<vmem>>, %arg4: memref<64x32xf32, #tpu.memory_space<vmem>>, %arg5: memref<32x32xf32, #tpu.memory_space<vmem>>, %arg6: memref<16x32xf32, #tpu.memory_space<vmem>>, %arg7: memref<16x32xf32, #tpu.memory_space<vmem>>) attributes {dimension_semantics = [#tpu.dimension_semantics<parallel>, #tpu.dimension_semantics<arbitrary>, #tpu.dimension_semantics<arbitrary>], iteration_bounds = array<i64: 1, 2, 1>, scalar_prefetch = 0 : i64, scratch_operands = 1 : i64, tpu.core_type = #tpu.core_type<tc>, window_params = [{transform_indices = @transform_0, window_bounds = array<i64: 16, 32>}, {transform_indices = @transform_1, window_bounds = array<i64: 64, 32>}, {transform_indices = @transform_2, window_bounds = array<i64: 32, 32>}, {transform_indices = @transform_3, window_bounds = array<i64: 16, 32>}]} {
    %c0_i32 = arith.constant 0 : i32
    %0 = arith.cmpi eq, %arg1, %c0_i32 : i32
    %c0_i32_0 = arith.constant 0 : i32
    %1 = arith.cmpi eq, %arg2, %c0_i32_0 : i32
    %2 = arith.andi %0, %1 : i1
    %3 = arith.extui %2 : i1 to i32
    %c0_i32_1 = arith.constant 0 : i32
    %4 = arith.cmpi ne, %3, %c0_i32_1 : i32
    scf.if %4 {
      %cst_15 = arith.constant 0.000000e+00 : f32
      %27 = vector.broadcast %cst_15 : f32 to vector<16x32xf32>
      %c0_16 = arith.constant 0 : index
      %c0_17 = arith.constant 0 : index
      %28 = vector.load %arg7[%c0_16, %c0_17] : memref<16x32xf32, #tpu.memory_space<vmem>>, vector<16x32xf32>
      tpu.vector_store %arg7[%c0_16, %c0_17], %27 {strides = array<i32>} : memref<16x32xf32, #tpu.memory_space<vmem>>, vector<16x32xf32>,
    } else {
    }
    %c0 = arith.constant 0 : index
    %c0_2 = arith.constant 0 : index
    %5 = vector.load %arg3[%c0, %c0_2] : memref<16x32xf32, #tpu.memory_space<vmem>>, vector<16x32xf32>
    %c0_3 = arith.constant 0 : index
    %c0_4 = arith.constant 0 : index
    %6 = vector.load %arg4[%c0_3, %c0_4] : memref<64x32xf32, #tpu.memory_space<vmem>>, vector<64x32xf32>
    %cst = arith.constant dense<0.000000e+00> : vector<16x64xf32>
    %7 = tpu.matmul %5, %6, %cst {dimension_numbers = #tpu.dot_dimension_numbers<[1], [1], [0], [0], [0, 0, 1, 0], [], []>} : vector<16x32xf32>, vector<64x32xf32>, vector<16x64xf32> -> vector<16x64xf32>
    %8 = vector.extract_strided_slice %7 {offsets = [0, 0], sizes = [16, 32], strides = [1, 1]} : vector<16x64xf32> to vector<16x32xf32>
    %9 = vector.extract_strided_slice %7 {offsets = [0, 32], sizes = [16, 32], strides = [1, 1]} : vector<16x64xf32> to vector<16x32xf32>
    %10 = arith.negf %8 : vector<16x32xf32>
    %11 = math.exp %10 : vector<16x32xf32>
    %cst_5 = arith.constant 1.000000e+00 : f32
    %12 = vector.broadcast %cst_5 : f32 to vector<16x32xf32>
    %13 = arith.addf %12, %11 : vector<16x32xf32>
    %14 = arith.divf %12, %13 : vector<16x32xf32>
    %15 = arith.mulf %8, %14 : vector<16x32xf32>
    %16 = arith.mulf %15, %9 : vector<16x32xf32>
    %c0_6 = arith.constant 0 : index
    %c0_7 = arith.constant 0 : index
    %17 = vector.load %arg7[%c0_6, %c0_7] : memref<16x32xf32, #tpu.memory_space<vmem>>, vector<16x32xf32>
    %c0_8 = arith.constant 0 : index
    %c0_9 = arith.constant 0 : index
    %18 = vector.load %arg5[%c0_8, %c0_9] : memref<32x32xf32, #tpu.memory_space<vmem>>, vector<32x32xf32>
    %cst_10 = arith.constant dense<0.000000e+00> : vector<16x32xf32>
    %19 = tpu.matmul %16, %18, %cst_10 {dimension_numbers = #tpu.dot_dimension_numbers<[1], [0], [0], [1], [0, 0, 1, 1], [], []>} : vector<16x32xf32>, vector<32x32xf32>, vector<16x32xf32> -> vector<16x32xf32>
    %20 = arith.addf %17, %19 : vector<16x32xf32>
    %c0_11 = arith.constant 0 : index
    %c0_12 = arith.constant 0 : index
    %21 = vector.load %arg7[%c0_11, %c0_12] : memref<16x32xf32, #tpu.memory_space<vmem>>, vector<16x32xf32>
    tpu.vector_store %arg7[%c0_11, %c0_12], %20 {strides = array<i32>} : memref<16x32xf32, #tpu.memory_space<vmem>>, vector<16x32xf32>,
    %c1_i32 = arith.constant 1 : i32
    %22 = arith.cmpi eq, %arg1, %c1_i32 : i32
    %c0_i32_13 = arith.constant 0 : i32
    %23 = arith.cmpi eq, %arg2, %c0_i32_13 : i32
    %24 = arith.andi %22, %23 : i1
    %25 = arith.extui %24 : i1 to i32
    %c0_i32_14 = arith.constant 0 : i32
    %26 = arith.cmpi ne, %25, %c0_i32_14 : i32
    scf.if %26 {
      %c0_15 = arith.constant 0 : index
      %c0_16 = arith.constant 0 : index
      %27 = vector.load %arg7[%c0_15, %c0_16] : memref<16x32xf32, #tpu.memory_space<vmem>>, vector<16x32xf32>
      %c0_17 = arith.constant 0 : index
      %c0_18 = arith.constant 0 : index
      %28 = vector.load %arg6[%c0_17, %c0_18] : memref<16x32xf32, #tpu.memory_space<vmem>>, vector<16x32xf32>
      tpu.vector_store %arg6[%c0_17, %c0_18], %27 {strides = array<i32>} : memref<16x32xf32, #tpu.memory_space<vmem>>, vector<16x32xf32>,
    } else {
    }
    return
  }
  func.func @transform_0(%arg0: i32, %arg1: i32, %arg2: i32) -> (i32, i32) {
    %c0_i32 = arith.constant 0 : i32
    %c0_i32_0 = arith.constant 0 : i32
    return %arg0, %c0_i32 : i32, i32
  }
  func.func @transform_1(%arg0: i32, %arg1: i32, %arg2: i32) -> (i32, i32) {
    %c1_i32 = arith.constant 1 : i32
    %0 = arith.muli %arg1, %c1_i32 : i32
    %1 = arith.addi %0, %arg2 : i32
    %c0_i32 = arith.constant 0 : i32
    %c0_i32_0 = arith.constant 0 : i32
    return %1, %c0_i32 : i32, i32
  }
  func.func @transform_2(%arg0: i32, %arg1: i32, %arg2: i32) -> (i32, i32) {
    %c1_i32 = arith.constant 1 : i32
    %0 = arith.muli %arg1, %c1_i32 : i32
    %1 = arith.addi %0, %arg2 : i32
    %c0_i32 = arith.constant 0 : i32
    %c0_i32_0 = arith.constant 0 : i32
    return %1, %c0_i32 : i32, i32
  }
  func.func @transform_3(%arg0: i32, %arg1: i32, %arg2: i32) -> (i32, i32) {
    %c0_i32 = arith.constant 0 : i32
    %c0_i32_0 = arith.constant 0 : i32
    return %arg0, %c0_i32 : i32, i32
  }
}

</mosaic_0001>

<bundles_post_ra>
// kernel: rtp_warpper_forward.1
= control target key start
LH: loop header
LB: loop body
LE: loop exit
PB: predicated region body
PF: predicated region fallthrough
CT: control target
= control target key end

     0   :  { %8 = vsyncpa [#allocation4], 0  ;;  %s814_s12 = smov 0   ;;  %s816_s13 = smov 0   ;;  %s924_s0 = inlined_call_operand.vmem [shape: f32[16,32], index: 0, kind: input, shape index: {}]   ;;  %s925_s1 = inlined_call_operand.vmem [shape: f32[128,32], index: 1, kind: input, shape index: {}]   ;;  %s926_s2 = inlined_call_operand.vmem [shape: f32[64,32], index: 2, kind: input, shape index: {}]   ;;  %s927_s3 = inlined_call_operand.hbm [shape: f32[16,32], index: 3, kind: output, shape index: {}]  }
   0x1   :  { %s818_s14 = smov 0  }
   0x2 LB: > { %s583_s15 = sadd.s32 4294967295, %s787_s14   ;;  %s29_s16 = sadd.s32 1, %s783_s13  ;;  %s787_s14 = sphi %s818_s14, %s14_s14   ;;  %s783_s13 = sphi %s816_s13, %s932_s13   ;;  %s779_s12 = sphi %s814_s12, %s931_s12  }
   0x3   : > { %p31_p0 = scmp.ge.s32.totalorder %s29_s16, 2  ;;  %p587_p1 = scmp.ge.s32.totalorder %s787_s14, 1 }
   0x4   : > { %p188_p2 = scmp.lt.s32.totalorder %s787_s14, 3 }
   0x5   : > { %s934_s16 = smov (%p31_p0, %s29_s16), 0 }
   0x6   : > { %p189_p3 = pnand %p587_p1, %p188_p2 }
   0x7   : > { %s588_s17 = sshll.u32 (!%p189_p3), %s779_s12, 3  ;;  %s590_s18 = sshll.u32 (!%p189_p3), %s779_s12, 2 }
   0x8   : > { %192 = sbr.rel (%p189_p3) target bundleno = 644 (0x284), region = 32  ;;  %p227_p4 = scmp.lt.s32.totalorder (!%p189_p3), %s588_s17, 15 }
   0x9   : > { %p235_p5 = scmp.lt.s32.totalorder (!%p189_p3), %s590_s18, 7  ;;  %p242_p6 = scmp.eq.s32.totalorder (!%p189_p3), %s779_s12, 0 }
   0xf   : > { %s936_s17 = smov (!%p227_p4, %s588_s17), 15  ;;  %s938_s18 = smov (!%p235_p5, %s590_s18), 7 }
  0x10   : > { %s589_s19 = sshll.u32 %s936_s17, 3  ;;  %s591_s23 = sshll.u32 %s938_s18, 3  ;;  %vm248_vm0 = vcmask (%p242_p6), 261120   ;;  %v789_v0 = vmov (%p242_p6), 0.0  }
  0x11   : > { %s230_s22 = scalar_lea.vmem %s925_s1, %s589_s19  ;;  %s844_s26 = scalar_lea.vmem %s926_s2, %s591_s23  ;;  %249 = vst.msk [vmem:[#allocation2] sm:$0xff] (%p242_p6), %vm248_vm0, %v789_v0  ;;  %250 = vst.msk [vmem:[#allocation2 + $0x8] sm:$0xff] (%p242_p6), %vm248_vm0, %v789_v0 }
  0x12   : > { %247 = sbr.rel (!%p242_p6) target bundleno = 25 (0x19), region = 36 }
  0x19 PF: > { %v253_v1 = vld [vmem:[%s230_s22] sm:$0xff]  ;;  %v254_v2 = vld [vmem:[%s230_s22 + $0x8] sm:$0xff]  ;;  %vm261_vm1 = vcmask 261120   ;;  %v255_v3 = vld [vmem:[%s230_s22 + $0x10] sm:$0xff]  ;;  %s790_s4 = smov 96   ;;  %p482_p7 = scmp.eq.s32.totalorder %s779_s12, 1 }
  0x1a   : > { %v660_v4 = vpack.c.bf16 %v254_v2, %v253_v1  ;;  %vm848_vm2 = vmpackc.low %vm261_vm1, %vm261_vm1  ;;  %v256_v6 = vld [vmem:[%s230_s22 + $0x18] sm:$0xff]  ;;  %v251_v8 = vld [vmem:[%s924_s0] sm:$0xff] }
  0x1b   : > { %v666_v7 = vpack.c.bf16 %v256_v6, %v255_v3  ;;  %646 = vmatprep.mubr.msk.f32.mxu0 %vm261_vm1, %v251_v8  ;;  %v257_v9 = vld [vmem:[%s230_s22 + $0x20] sm:$0xff]  ;;  %v258_v10 = vld [vmem:[%s230_s22 + $0x28] sm:$0xff]  ;;  %v259_v12 = vld [vmem:[%s230_s22 + $0x30] sm:$0xff] }
  0x1c   : > { %662 = vmatprep.subr.msk.bf16.mxu0 %vm848_vm2, %v660_v4  ;;  %v672_v11 = vpack.c.bf16 %v258_v10, %v257_v9  ;;  %v260_v13 = vld [vmem:[%s230_s22 + $0x38] sm:$0xff]  ;;  %v252_v15 = vld [vmem:[%s924_s0 + $0x8] sm:$0xff]  ;;  %v393_v16 = vld [vmem:[%s844_s26] sm:$0xff] }
  0x1d   : > { %665 = vmatpush3.bf16.xpose.msk.msra.mxu0 %vm848_vm2, %v660_v4  ;;  %v678_v14 = vpack.c.bf16 %v260_v13, %v259_v12  ;;  %v394_v17 = vld [vmem:[%s844_s26 + $0x8] sm:$0xff]  ;;  %v395_v19 = vld [vmem:[%s844_s26 + $0x10] sm:$0xff]  ;;  %v396_v20 = vld [vmem:[%s844_s26 + $0x18] sm:$0xff] }
  0x1e   : > { %668 = vmatprep.subr.msk.bf16.mxu0 %vm848_vm2, %v666_v7  ;;  %v684_v18 = vpack.c.bf16 %v394_v17, %v393_v16  ;;  %v688_v21 = vpack.c.bf16 %v396_v20, %v395_v19  ;;  %v392_v38 = vld [vmem:[#allocation2 + $0x8] sm:$0xff]  ;;  %v391_v39 = vld [vmem:[#allocation2] sm:$0xff] }
  0x20   : > { %685 = vmatprep.subr.bf16.mxu1 %v684_v18 }
  0x21   : > { %687 = vmatpush3.bf16.msra.mxu1 %v684_v18 }
  0x22   : > { %689 = vmatprep.subr.bf16.mxu1 %v688_v21 }
  0x25   : > { %671 = vmatpush3.bf16.xpose.msk.msra.mxu0 %vm848_vm2, %v666_v7  ;;  %691 = vmatpush3.bf16.msra.mxu1 %v688_v21 }
  0x26   : > { %674 = vmatprep.subr.msk.bf16.mxu0 %vm848_vm2, %v672_v11 }
  0x2d   : > { %677 = vmatpush3.bf16.xpose.msk.msra.mxu0 %vm848_vm2, %v672_v11 }
  0x2e   : > { %680 = vmatprep.subr.msk.bf16.mxu0 %vm848_vm2, %v678_v14 }
  0x35   : > { %683 = vmatpush3.bf16.xpose.msk.msra.mxu0 %vm848_vm2, %v678_v14 }
  0x3c   : > { %647 = vmatmul.mubr.msk.f32.vlgmr.msra.gmra.mrb[0].mxu0 %vm261_vm1, %v252_v15 }
 0x10f   : > { %v648_v22 = vpop.f32.mrb[0].mxu0 }
 0x110   : > { %v358_v23 = vpop.f32.mrb[1].mxu0  ;;  %v604_v25 = vmul.f32 -1.442695, %v648_v22 }
 0x111   : > { %383 = vrot.lane.b32.xlu0 %v358_v23, %s790_s4  ;;  %v603_v24 = vmul.f32 -1.442695, %v358_v23 }
 0x113   : > { %727 = vpow2.f32 %v603_v24 }
 0x114   : > { %729 = vpow2.f32 %v604_v25 }
 0x115   : > { %385 = vrot.lane.b32.xlu0 %v648_v22, %s790_s4 }
 0x11d   : > { %v728_v26 = vpop.eup %727 }
 0x11e   : > { %v373_v27 = vadd.f32 1.0, %v728_v26  ;;  %v730_v28 = vpop.eup %729 }
 0x11f   : > { %v374_v29 = vadd.f32 1.0, %v730_v28 }
 0x120   : > { %731 = vrcp.f32 %v373_v27 }
 0x121   : > { %733 = vrcp.f32 %v374_v29 }
 0x12a   : > { %v732_v30 = vpop.eup %731 }
 0x12b   : > { %v379_v31 = vmul.f32 %v732_v30, %v358_v23  ;;  %v734_v32 = vpop.eup %733 }
 0x12c   : > { %v380_v35 = vmul.f32 %v734_v32, %v648_v22 }
 0x183   : > { %v384_v33 = vpop.permute.xlu0 %383 }
 0x184   : > { %v389_v34 = vmul.f32 %v384_v33, %v379_v31 }
 0x186   : > { %657 = vmatprep.mubr.msk.f32.mxu1 %vm261_vm1, %v389_v34 }
 0x187   : > { %v386_v36 = vpop.permute.xlu0 %385 }
 0x188   : > { %v390_v37 = vmul.f32 %v386_v36, %v380_v35 }
 0x18a   : > { %658 = vmatmul.mubr.msk.f32.vlgmr.msra.gmra.mrb[0].mxu1 %vm261_vm1, %v390_v37 }
 0x25b   : > { %486 = sbr.rel (!%p482_p7) target bundleno = 618 (0x26a), region = 40 }
 0x25d   : > { %v659_v40 = vpop.f32.mrb[0].mxu1 }
 0x25e   : > { %v479_v41 = vadd.f32 %v659_v40, %v392_v38  ;;  %v469_v42 = vpop.f32.mrb[1].mxu1 }
 0x25f   : > { %v478_v43 = vadd.f32 %v469_v42, %v391_v39 }
 0x260   : > { %481 = vst.msk [vmem:[#allocation2 + $0x8] sm:$0xff] %vm261_vm1, %v479_v41 }
 0x261   : > { %480 = vst.msk [vmem:[#allocation2] sm:$0xff] %vm261_vm1, %v478_v43 }
 0x267   : > { %v488_v45 = vld [vmem:[#allocation2 + $0x8] sm:$0xff] }
 0x268   : > { %v487_v44 = vld [vmem:[#allocation2] sm:$0xff]  ;;  %490 = vst.msk [vmem:[#allocation3 + $0x8] sm:$0xff] %vm261_vm1, %v488_v45 }
 0x269   : > { %489 = vst.msk [vmem:[#allocation3] sm:$0xff] %vm261_vm1, %v487_v44 }
 0x26a PF: > { %p889_p8 = scmp.eq.s32.totalorder %s583_s15, 1  ;;  %s791_s6 = smov [#allocation3]  }
 0x26b   : > { %s500_s7 = sshll.u32 %s791_s6, 4  ;;  %s501_s7 = int_to_ptr.vmem [resolvable:$true] %s500_s7 }
 0x26c   : > { %s735_s8 = scalar_lea.vmem %s501_s7, 256  ;;  %p742_p12 = scmp.lt.s32.totalorder %s501_s7, %s501_s7 }
 0x26d   : > { %p736_p9 = scmp.ne.s32.totalorder %s501_s7, %s735_s8  ;;  %p743_p13 = scmp.lt.s32.totalorder %s735_s8, %s735_s8 }
 0x26f   : > { %p737_p10 = pnand %p736_p9, %p889_p8  ;;  %p744_p0 = por %p743_p13, %p742_p12 }
 0x271   : > { %p738_p11 = pneg %p737_p10 }
 0x273   : > { %p745_p1 = pnand %p744_p0, %p738_p11 }
 0x275   : > { %748 = shalt.err (!%p745_p1)
}
 0x276   : > { %s749_s11 = scalar_lea.hbm %s927_s3, 256 }
 0x277   : > { %p750_p2 = scmp.ne.s32.totalorder %s927_s3, %s749_s11  ;;  %p755_p5 = scmp.lt.u32.totalorder %s749_s11, %s927_s3 }
 0x279   : > { %p751_p3 = pnand %p750_p2, %p889_p8 }
 0x27b   : > { %p752_p4 = pneg %p751_p3 }
 0x27d   : > { %p757_p6 = pnand %p755_p5, %p752_p4 }
 0x27f   : > { %760 = shalt.err (!%p757_p6)
}
 0x280   : > { %s792_s19 = smov 128   ;;  %s793_s20 = smov 8  }
 0x281   : > { %693 = dma.vmem_to_hbm [thread:$0]  (%p889_p8), %s501_s7, 256, %s927_s3, [#allocation4], %s792_s19, %s792_s19, %s793_s20  }
 0x282   : > { %774 = dma.done.wait (%p889_p8), [#allocation4], 256  }
 0x283   : > { %776 = vsyncadd (%p889_p8), [#allocation4], 4294967040 }
 0x284 PF: > { %s14_s14 = sadd.s32 1, %s787_s14   ;;  %s931_s12 = smov %s783_s13 }
 0x285   : > { %p11_p7 = scmp.ge.s32.totalorder %s14_s14, 4   ;;  %s932_s13 = smov %s934_s16 }
 0x287   :  { %13 = sbr.rel (!%p11_p7) target bundleno = 2 (0x2), region = 74 }
 0x28e   :  { %516 = vsyncpa [#allocation4], 1 }
 0x28f   :  { %518 = vsyncpa [#allocation4 + $0x1], 1 }

</bundles_post_ra>
